<compile_context>
chip_gen: v7x
topology: tpu7x:2x2x1
jax: 0.10.0
libtpu: 0.0.40
codegen_flags: <defaults>
</compile_context>

<pallas_src>
import math
import numpy as np
import jax
import jax.numpy as jnp
from jax.experimental import pallas as pl
from jax.experimental.pallas import tpu as pltpu

# Deterministic "haar" coefficients (pywt.Wavelet('haar').rec_lo / rec_hi).
_INV_SQRT2 = 1.0 / math.sqrt(2.0)
HAAR_REC_LO = [_INV_SQRT2, _INV_SQRT2]
HAAR_REC_HI = [_INV_SQRT2, -_INV_SQRT2]
# TODO(synk): other pywt wavelets only need their rec_lo/rec_hi tables here.


def build_dwt_matrices(input_height, input_width, band_low, band_high,
                       dtype=np.float32):
    """Faithful reproduction of DWT_2D.get_matrix (numpy, no pywt needed)."""
    band_length = len(band_low)
    assert band_length == len(band_high) and band_length % 2 == 0
    band_length_half = math.floor(band_length / 2)

    L1 = max(input_height, input_width)
    L = math.floor(L1 / 2)
    matrix_g = np.zeros((L1 - L, L1 + band_length - 2))
    if input_height % 2 == 0:
        matrix_h = np.zeros((L, L1 + band_length - 2))
    else:
        matrix_h = np.zeros((L + 1, L1 + band_length - 2))
    end = None if band_length_half == 1 else -band_length_half + 1

    index = 0
    for i in range(L):
        for j in range(band_length):
            matrix_h[i, index + j] = band_low[j]
        index += 2
    matrix_h_0 = matrix_h[0:math.floor(input_height / 2 + 1),
                          0:input_height + band_length - 2]
    matrix_h_1 = matrix_h[0:math.floor(input_width / 2 + 1),
                          0:input_width + band_length - 2]

    index = 0
    # Note: range(L1 - L - 1) is faithful to the PyTorch spec; the last row of
    # matrix_g stays zero for some sizes.  Do NOT "fix" it.
    for i in range(L1 - L - 1):
        for j in range(band_length):
            matrix_g[i, index + j] = band_high[j]
        index += 2
    matrix_g_0 = matrix_g[0:math.floor(input_height / 2 + 1),
                          0:input_height + band_length - 2]
    matrix_g_1 = matrix_g[0:math.floor(input_width / 2 + 1),
                          0:input_width + band_length - 2]

    matrix_h_0 = matrix_h_0[:, band_length_half - 1:end]
    matrix_h_1 = matrix_h_1[:, band_length_half - 1:end]
    matrix_h_1 = np.transpose(matrix_h_1)
    matrix_g_0 = matrix_g_0[:, band_length_half - 1:end]
    matrix_g_1 = matrix_g_1[:, band_length_half - 1:end]
    matrix_g_1 = np.transpose(matrix_g_1)

    return (matrix_h_0.astype(dtype),   # matrix_low_0  : (p_lo, H)
            matrix_h_1.astype(dtype),   # matrix_low_1  : (W, q_lo)
            matrix_g_0.astype(dtype),   # matrix_high_0 : (p_hi, H)
            matrix_g_1.astype(dtype))   # matrix_high_1 : (W, q_hi)


# --------------------------------------------------------------------------- #
# Helpers
# --------------------------------------------------------------------------- #
def _round_up(x, m):
    return ((x + m - 1) // m) * m


def _block_diag(m, f):
    """f copies of m on the diagonal (numpy, built once on host)."""
    if f == 1:
        return m
    r, c = m.shape
    out = np.zeros((f * r, f * c), dtype=m.dtype)
    for i in range(f):
        out[i * r:(i + 1) * r, i * c:(i + 1) * c] = m
    return out


def _const_spec(shape):
    """Resident constant operand: constant index_map + single pipeline buffer."""
    idx = lambda i: (0,) * len(shape)
    try:
        return pl.BlockSpec(shape, idx, pipeline_mode=pl.Buffered(1))
    except Exception:  # older JAX without pipeline_mode / Buffered
        return pl.BlockSpec(shape, idx)


def _vmem_plan(n_slices, h, wk, p, qk, isz, f2_target, const_bytes, fused):
    """Pick slices-per-grid-step (TB), height-fold F2 and the VMEM envelope,
    sized per TPU generation and accounting for the in-kernel scratch."""
    try:
        info = pltpu.get_tpu_info()
        cap = int(getattr(info, "vmem_capacity_bytes", 64 * 1024 * 1024))
    except Exception:
        cap = 64 * 1024 * 1024                       # conservative (v7x-sized)
    if cap >= 100 * 1024 * 1024:                     # v5e / v6e: 128 MiB physical
        vmem_limit = 80 * 1024 * 1024
        block_budget = 40 * 1024 * 1024
    else:                                            # v7x: 64 MiB per TensorCore
        vmem_limit = 28 * 1024 * 1024
        block_budget = 14 * 1024 * 1024

    per_slice = (2 * h * wk * isz                    # input block, double-buffered
                 + 2 * p * qk * isz                  # output block, double-buffered
                 + (h * qk * isz if fused else 0))   # width-pass VMEM scratch
    # constants (single-buffered) + f32 height-pass chunk + regalloc headroom
    reserved = const_bytes + f2_target * p * qk * 4 + 2 * 1024 * 1024
    tb = max(1, (block_budget - reserved) // max(per_slice, 1))
    tb = int(min(tb, n_slices, 1024))
    if n_slices >= 2:                                # keep >= 2 grid steps (v7x: 2 TCs)
        tb = min(tb, -(-n_slices // 2))
    f2 = max(1, min(f2_target, tb))
    tb = max(f2, (tb // f2) * f2)                    # TB must be a multiple of F2
    return tb, f2, vmem_limit


# --------------------------------------------------------------------------- #
# Kernels
# --------------------------------------------------------------------------- #
def _make_fused_kernel(tb, h, wk, p, qk, f2):
    """Width pass: one (tb*h, wk)@(wk, qk) matmul into VMEM scratch.
    Height pass: tb//f2 chunks of (f2*p, f2*h)@(f2*h, qk) written straight
    into out_ref.  No concatenate, lane-dense stores."""
    n_chunks = tb // f2
    rows = f2 * h

    def kernel(x_ref, m1_ref, m0_ref, out_ref, r_ref):
        # Width pass (single fused MXU matmul). reshape is free: h % 8 == 0.
        xf = x_ref[...].reshape(tb * h, wk)
        r_ref[...] = jnp.dot(xf, m1_ref[...],
                             preferred_element_type=jnp.float32
                             ).astype(r_ref.dtype)

        m0 = m0_ref[...]                             # (f2*p, f2*h) block-diagonal

        def chunk(c):
            start = c * rows
            off = c * f2
            if not isinstance(start, int):           # dynamic index: alignment hints
                start = pl.multiple_of(start, rows)
                off = pl.multiple_of(off, f2)
            rb = r_ref[pl.ds(start, rows), :]
            y = jnp.dot(m0, rb, preferred_element_type=jnp.float32)
            out_ref[pl.ds(off, f2)] = y.reshape(f2, p, qk).astype(out_ref.dtype)

        if n_chunks <= 8:                            # short: static unroll
            for c in range(n_chunks):
                chunk(c)
        else:                                        # long: scf.for, no trace bloat
            @pl.loop(0, n_chunks)
            def _(c):
                chunk(c)

    return kernel


def _make_slice_kernel(tb):
    """Fallback for sublane-unaligned H (H % 8 != 0): per-slice 2-D matmuls."""
    def kernel(x_ref, m1_ref, m0_ref, out_ref):
        m1 = m1_ref[...]
        m0 = m0_ref[...]

        def one(b):
            r = jnp.dot(x_ref[b], m1,
                        preferred_element_type=jnp.float32).astype(x_ref.dtype)
            out_ref[b] = jnp.dot(m0, r,
                                 preferred_element_type=jnp.float32
                                 ).astype(out_ref.dtype)

        if tb <= 8:
            for b in range(tb):
                one(b)
        else:
            @pl.loop(0, tb)
            def _(b):
                one(b)

    return kernel


# --------------------------------------------------------------------------- #
# Wrapper
# --------------------------------------------------------------------------- #
def dwt_2d(x, wavename="haar"):
    """Forward pass of DWT_2D.  Returns (LL, LH, HL, HH), NCHW layout."""
    assert x.ndim == 4
    assert wavename == "haar"
    B, C, H, W = x.shape
    ml0, ml1, mh0, mh1 = build_dwt_matrices(H, W, HAAR_REC_LO, HAAR_REC_HI)
    p_lo, p_hi = ml0.shape[0], mh0.shape[0]
    q_lo, q_hi = ml1.shape[1], mh1.shape[1]
    P, Q = p_lo + p_hi, q_lo + q_hi

    # Fused matrices: Y = M0 @ X @ M1 == [[LL, LH], [HL, HH]].
    m0_np = np.concatenate([ml0, mh0], axis=0)       # (P, H)
    m1_np = np.concatenate([ml1, mh1], axis=1)       # (W, Q)

    BC = B * C
    isz = jnp.dtype(x.dtype).itemsize
    x_flat = x.reshape(BC, H, W)

    aligned = (H % 8 == 0)
    # Lane folding: pack F slices side-by-side along lanes so the output last
    # dim is exactly 128 (unmasked stores) and the width-pass K dim is F*W.
    lane_fold = aligned and Q < 128 and (128 % Q == 0) and W <= 128
    if lane_fold:
        F = 128 // Q
        G = pl.cdiv(BC, F)
        if G * F != BC:
            x_flat = jnp.pad(x_flat, ((0, G * F - BC), (0, 0), (0, 0)))
        # (G*F, H, W) -> (G, H, F*W): wrapper-side layout plumbing.
        x_in = x_flat.reshape(G, F, H, W).transpose(0, 2, 1, 3).reshape(G, H, F * W)
        m1_np = _block_diag(m1_np, F)                # (F*W, F*Q)
        Wk, Qk = F * W, F * Q
        n_slices = G
    else:
        F = 1
        Qk = Q if Q % 128 == 0 else _round_up(Q, 128)
        if Qk != Q:                                  # zero-pad columns -> lane-dense
            m1_np = np.concatenate(
                [m1_np, np.zeros((W, Qk - Q), m1_np.dtype)], axis=1)
        Wk = W
        x_in = x_flat
        n_slices = BC

    fused = aligned
    # Height-pass K-fill target: F2*H ~ 128-256 (needs free (F2*P,Qk)->(F2,P,Qk) reshape).
    if fused and P % 8 == 0:
        f2_target = max(1, min(16, 256 // max(H, 1)))
    else:
        f2_target = 1

    const_upper = (m1_np.size + f2_target * f2_target * m0_np.size) * isz
    TB, F2, vmem_limit = _vmem_plan(n_slices, H, Wk, P, Qk, isz, f2_target,
                                    const_upper, fused)

    m0blk_np = _block_diag(m0_np, F2)                # (F2*P, F2*H)
    m0_dev = jnp.asarray(m0blk_np, dtype=x.dtype)
    m1_dev = jnp.asarray(m1_np, dtype=x.dtype)

    n_blk = pl.cdiv(n_slices, TB)
    n_pad = n_blk * TB
    if n_pad != n_slices:
        x_in = jnp.pad(x_in, ((0, n_pad - n_slices), (0, 0), (0, 0)))

    if fused:
        kernel = _make_fused_kernel(TB, H, Wk, P, Qk, F2)
        scratch = [pltpu.VMEM((TB * H, Qk), x.dtype)]
    else:
        kernel = _make_slice_kernel(TB)
        scratch = []

    cost = pl.CostEstimate(
        flops=int(2 * n_pad * H * Wk * Qk + 2 * n_pad * P * F2 * H * Qk),
        transcendentals=0,
        bytes_accessed=int(isz * (n_pad * (H * Wk + P * Qk)
                                  + m1_dev.size + m0_dev.size)),
    )

    y = pl.pallas_call(
        kernel,
        out_shape=jax.ShapeDtypeStruct((n_pad, P, Qk), x.dtype),
        grid_spec=pltpu.PrefetchScalarGridSpec(
            num_scalar_prefetch=0,
            grid=(n_blk,),
            in_specs=[
                pl.BlockSpec((TB, H, Wk), lambda i: (i, 0, 0)),
                _const_spec((Wk, Qk)),               # fused / block-diag M1
                _const_spec((F2 * P, F2 * H)),       # block-diag M0
            ],
            out_specs=pl.BlockSpec((TB, P, Qk), lambda i: (i, 0, 0)),
            scratch_shapes=scratch,
        ),
        compiler_params=pltpu.CompilerParams(
            dimension_semantics=("parallel",),
            vmem_limit_bytes=int(vmem_limit),
        ),
        cost_estimate=cost,
    )(x_in, m1_dev, m0_dev)

    if lane_fold:
        # (G, P, F*Q) -> (BC, P, Q): undo the lane folding.
        y = y[:n_slices].reshape(n_slices, P, F, Q).transpose(0, 2, 1, 3)
        y = y.reshape(n_slices * F, P, Q)[:BC]
    else:
        y = y[:BC, :, :Q]
    y = y.reshape(B, C, P, Q)

    LL = y[:, :, :p_lo, :q_lo]
    LH = y[:, :, :p_lo, q_lo:]
    HL = y[:, :, p_lo:, :q_lo]
    HH = y[:, :, p_lo:, q_lo:]
    return LL, LH, HL, HH


# --------------------------------------------------------------------------- #
# Pure-JAX reference (mirrors the PyTorch forward: six broadcast matmuls)
# --------------------------------------------------------------------------- #
def _reference(x):
    B, C, H, W = x.shape
    ml0, ml1, mh0, mh1 = build_dwt_matrices(H, W, HAAR_REC_LO, HAAR_REC_HI)
    ml0, ml1, mh0, mh1 = (jnp.asarray(m, x.dtype) for m in (ml0, ml1, mh0, mh1))
    L = jnp.einsum("ph,bchw->bcpw", ml0, x)
    Hc = jnp.einsum("ph,bchw->bcpw", mh0, x)
    LL = jnp.einsum("bcpw,wq->bcpq", L, ml1)
    LH = jnp.einsum("bcpw,wq->bcpq", L, mh1)
    HL = jnp.einsum("bcpw,wq->bcpq", Hc, ml1)
    HH = jnp.einsum("bcpw,wq->bcpq", Hc, mh1)
    return LL, LH, HL, HH


if __name__ == "__main__":
    key = jax.random.PRNGKey(0)
    x = jax.random.normal(key, (2, 4, 16, 16), dtype=jnp.float32)

    outs = dwt_2d(x, wavename="haar")
    outs = jax.block_until_ready(outs)

    refs = _reference(x)
    for got, want in zip(outs, refs):
        assert got.shape == want.shape and got.dtype == want.dtype
        np.testing.assert_allclose(np.asarray(got), np.asarray(want),
                                   rtol=1e-5, atol=1e-5)

    print("KERNEL_OK")
</pallas_src>

<mosaic_0001>
module attributes {stable_mosaic.version = 11 : i64} {
  func.func @kernel(%arg0: i32, %arg1: memref<1x16x128xf32, #tpu.memory_space<vmem>>, %arg2: memref<128x128xf32, #tpu.memory_space<vmem>>, %arg3: memref<16x16xf32, #tpu.memory_space<vmem>>, %arg4: memref<1x16x128xf32, #tpu.memory_space<vmem>>, %arg5: memref<16x128xf32, #tpu.memory_space<vmem>>) attributes {dimension_semantics = [#tpu.dimension_semantics<parallel>], iteration_bounds = array<i64: 1>, scalar_prefetch = 0 : i64, scratch_operands = 1 : i64, tpu.core_type = #tpu.core_type<tc>, window_params = [{transform_indices = @transform_0, window_bounds = array<i64: 1, 16, 128>}, {pipeline_mode = #tpu.pipeline_mode<synchronous>, transform_indices = @transform_1, window_bounds = array<i64: 128, 128>}, {pipeline_mode = #tpu.pipeline_mode<synchronous>, transform_indices = @transform_2, window_bounds = array<i64: 16, 16>}, {transform_indices = @transform_3, window_bounds = array<i64: 1, 16, 128>}]} {
    %c0 = arith.constant 0 : index
    %c0_0 = arith.constant 0 : index
    %c0_1 = arith.constant 0 : index
    %0 = vector.load %arg1[%c0, %c0_0, %c0_1] : memref<1x16x128xf32, #tpu.memory_space<vmem>>, vector<1x16x128xf32>
    %1 = vector.shape_cast %0 : vector<1x16x128xf32> to vector<16x128xf32>
    %c0_2 = arith.constant 0 : index
    %c0_3 = arith.constant 0 : index
    %2 = vector.load %arg2[%c0_2, %c0_3] : memref<128x128xf32, #tpu.memory_space<vmem>>, vector<128x128xf32>
    %cst = arith.constant dense<0.000000e+00> : vector<16x128xf32>
    %3 = tpu.matmul %1, %2, %cst {dimension_numbers = #tpu.dot_dimension_numbers<[1], [0], [0], [1], [0, 0, 1, 1], [], []>} : vector<16x128xf32>, vector<128x128xf32>, vector<16x128xf32> -> vector<16x128xf32>
    %c0_4 = arith.constant 0 : index
    %c0_5 = arith.constant 0 : index
    %4 = vector.load %arg5[%c0_4, %c0_5] : memref<16x128xf32, #tpu.memory_space<vmem>>, vector<16x128xf32>
    tpu.vector_store %arg5[%c0_4, %c0_5], %3 {strides = array<i32>} : memref<16x128xf32, #tpu.memory_space<vmem>>, vector<16x128xf32>,
    %c0_6 = arith.constant 0 : index
    %c0_7 = arith.constant 0 : index
    %5 = vector.load %arg3[%c0_6, %c0_7] : memref<16x16xf32, #tpu.memory_space<vmem>>, vector<16x16xf32>
    %c0_8 = arith.constant 0 : index
    %c0_9 = arith.constant 0 : index
    %6 = vector.load %arg5[%c0_8, %c0_9] : memref<16x128xf32, #tpu.memory_space<vmem>>, vector<16x128xf32>
    %cst_10 = arith.constant dense<0.000000e+00> : vector<16x128xf32>
    %7 = tpu.matmul %5, %6, %cst_10 {dimension_numbers = #tpu.dot_dimension_numbers<[1], [0], [0], [1], [0, 0, 1, 1], [], []>} : vector<16x16xf32>, vector<16x128xf32>, vector<16x128xf32> -> vector<16x128xf32>
    %8 = vector.shape_cast %7 : vector<16x128xf32> to vector<1x16x128xf32>
    %c0_11 = arith.constant 0 : index
    %c0_12 = arith.constant 0 : index
    %c0_13 = arith.constant 0 : index
    %9 = vector.load %arg4[%c0_11, %c0_12, %c0_13] : memref<1x16x128xf32, #tpu.memory_space<vmem>>, vector<1x16x128xf32>
    tpu.vector_store %arg4[%c0_11, %c0_12, %c0_13], %8 {strides = array<i32>} : memref<1x16x128xf32, #tpu.memory_space<vmem>>, vector<1x16x128xf32>,
    return
  }
  func.func @transform_0(%arg0: i32) -> (i32, i32, i32) {
    %c0_i32 = arith.constant 0 : i32
    %c0_i32_0 = arith.constant 0 : i32
    %c0_i32_1 = arith.constant 0 : i32
    return %arg0, %c0_i32, %c0_i32_0 : i32, i32, i32
  }
  func.func @transform_1(%arg0: i32) -> (i32, i32) {
    %c0_i32 = arith.constant 0 : i32
    %c0_i32_0 = arith.constant 0 : i32
    %c0_i32_1 = arith.constant 0 : i32
    return %c0_i32, %c0_i32_0 : i32, i32
  }
  func.func @transform_2(%arg0: i32) -> (i32, i32) {
    %c0_i32 = arith.constant 0 : i32
    %c0_i32_0 = arith.constant 0 : i32
    %c0_i32_1 = arith.constant 0 : i32
    return %c0_i32, %c0_i32_0 : i32, i32
  }
  func.func @transform_3(%arg0: i32) -> (i32, i32, i32) {
    %c0_i32 = arith.constant 0 : i32
    %c0_i32_0 = arith.constant 0 : i32
    %c0_i32_1 = arith.constant 0 : i32
    return %arg0, %c0_i32, %c0_i32_0 : i32, i32, i32
  }
}

</mosaic_0001>

<bundles_post_ra>
// kernel: tpu_custom_call.1
= control target key start
LH: loop header
LB: loop body
LE: loop exit
PB: predicated region body
PF: predicated region fallthrough
CT: control target
= control target key end

     0   :  { %8 = vsyncpa [#allocation4], 0  ;;  %s552_s0 = inlined_call_operand.hbm [shape: f32[1,16,128], index: 0, kind: input, shape index: {}]   ;;  %s553_s1 = inlined_call_operand.hbm [shape: f32[128,128], index: 1, kind: input, shape index: {}]   ;;  %s554_s2 = inlined_call_operand.hbm [shape: f32[16,16], index: 2, kind: input, shape index: {}]   ;;  %s555_s3 = inlined_call_operand.hbm [shape: f32[1,16,128], index: 3, kind: output, shape index: {}]  }
   0x1   :  { %9 = vsyncpa [#allocation7], 0 }
   0x2   :  { %10 = vsyncpa [#allocation5], 0  ;;  %s459_s12 = smov [#allocation6]   ;;  %s460_s14 = smov [#allocation3]  }
   0x3   :  { %s28_s13 = sshll.u32 %s459_s12, 4  ;;  %s16_s15 = sshll.u32 %s460_s14, 4  ;;  %s29_s13 = int_to_ptr.vmem [resolvable:$true] %s28_s13  ;;  %s485_s15 = int_to_ptr.vmem [resolvable:$true] %s16_s15 }
   0x4   :  { %s365_s18 = scalar_lea.hbm %s553_s1, 2048 }
   0x5   :  { %p366_p0 = scmp.ne.s32.totalorder %s553_s1, %s365_s18  ;;  %p369_p1 = scmp.lt.u32.totalorder %s365_s18, %s553_s1 }
   0x7   :  { %p371_p2 = pnand %p369_p1, %p366_p0 }
   0x9   :  { %374 = shalt.err (!%p371_p2)
}
   0xa   :  { %s375_s23 = scalar_lea.vmem %s29_s13, 2048  ;;  %p380_p4 = scmp.lt.s32.totalorder %s29_s13, %s29_s13 }
   0xb   :  { %p376_p3 = scmp.ne.s32.totalorder %s29_s13, %s375_s23  ;;  %p381_p5 = scmp.lt.s32.totalorder %s375_s23, %s375_s23 }
   0xd   :  { %p382_p6 = por %p381_p5, %p380_p4 }
   0xf   :  { %p383_p7 = pnand %p382_p6, %p376_p3 }
  0x11   :  { %386 = shalt.err (!%p383_p7)
}
  0x12   :  { %s461_s24 = smov 128   ;;  %s462_s25 = smov 8  }
  0x13   :  { %34 = dma.hbm_to_vmem [thread:$0]  %s553_s1, 2048, %s29_s13, [#allocation7], %s461_s24, %s461_s24, %s462_s25  }
  0x14   :  { %s387_s30 = scalar_lea.hbm %s552_s0, 256 }
  0x15   :  { %p388_p8 = scmp.ne.s32.totalorder %s552_s0, %s387_s30  ;;  %p391_p9 = scmp.lt.u32.totalorder %s387_s30, %s552_s0 }
  0x17   :  { %p393_p10 = pnand %p391_p9, %p388_p8 }
  0x19   :  { %396 = shalt.err (!%p393_p10)
}
  0x1a   :  { %s397_s8 = scalar_lea.vmem %s485_s15, 256  ;;  %p402_p12 = scmp.lt.s32.totalorder %s485_s15, %s485_s15 }
  0x1b   :  { %p398_p11 = scmp.ne.s32.totalorder %s485_s15, %s397_s8  ;;  %p403_p13 = scmp.lt.s32.totalorder %s397_s8, %s397_s8 }
  0x1d   :  { %p404_p0 = por %p403_p13, %p402_p12 }
  0x1f   :  { %p405_p1 = pnand %p404_p0, %p398_p11 }
  0x21   :  { %408 = shalt.err (!%p405_p1)
}
  0x22   :  { %22 = dma.hbm_to_vmem [thread:$0]  %s552_s0, 256, %s485_s15, [#allocation4], %s461_s24, %s461_s24, %s462_s25  }
  0x23   :  { %s463_s10 = smov [#allocation8]   ;;  %s409_s14 = scalar_lea.hbm %s554_s2, 256 }
  0x24   :  { %s40_s11 = sshll.u32 %s463_s10, 4  ;;  %p410_p2 = scmp.ne.s32.totalorder %s554_s2, %s409_s14  ;;  %s41_s11 = int_to_ptr.vmem [resolvable:$true] %s40_s11 }
  0x25   :  { %p413_p3 = scmp.lt.u32.totalorder %s409_s14, %s554_s2 }
  0x27   :  { %p415_p4 = pnand %p413_p3, %p410_p2 }
  0x29   :  { %418 = shalt.err (!%p415_p4)
}
  0x2a   :  { %s419_s20 = scalar_lea.vmem %s41_s11, 256  ;;  %p424_p6 = scmp.lt.s32.totalorder %s41_s11, %s41_s11 }
  0x2b   :  { %p420_p5 = scmp.ne.s32.totalorder %s41_s11, %s419_s20  ;;  %p425_p7 = scmp.lt.s32.totalorder %s419_s20, %s419_s20 }
  0x2d   :  { %p426_p8 = por %p425_p7, %p424_p6 }
  0x2f   :  { %p427_p9 = pnand %p426_p8, %p420_p5 }
  0x31   :  { %430 = shalt.err (!%p427_p9)
}
  0x32   :  { %46 = dma.hbm_to_vmem [thread:$0]  %s554_s2, 256, %s41_s11, [#allocation7], %s461_s24, %s461_s24, %s462_s25  }
  0x33   :  { %453 = dma.done.wait [#allocation4], 256  }
  0x34   :  { %454 = vsyncadd [#allocation4], 4294967040 }
  0x35   :  { %455 = dma.done.wait [#allocation7], 2304  }
  0x36   :  { %456 = vsyncadd [#allocation7], 4294964992  ;;  %v58_v0 = vld [vmem:[#allocation6] sm:$0xff]  ;;  %v59_v1 = vld [vmem:[#allocation6 + $0x8] sm:$0xff]  ;;  %vm155_vm0 = vcmask 130048   ;;  %s464_s2 = smov [#allocation9]  }
  0x37   :  { %v60_v2 = vld [vmem:[#allocation6 + $0x10] sm:$0xff]  ;;  %v323_v3 = vpack.c.bf16 %v59_v1, %v58_v0  ;;  %v61_v4 = vld [vmem:[#allocation6 + $0x18] sm:$0xff]  ;;  %v62_v6 = vld [vmem:[#allocation6 + $0x20] sm:$0xff]  ;;  %s244_s21 = sshll.u32 %s464_s2, 4  ;;  %s245_s21 = int_to_ptr.vmem [resolvable:$true] %s244_s21 }
  0x38   :  { %v327_v5 = vpack.c.bf16 %v61_v4, %v60_v2  ;;  %v63_v7 = vld [vmem:[#allocation6 + $0x28] sm:$0xff]  ;;  %v56_v9 = vld [vmem:[#allocation3] sm:$0xff]  ;;  %v65_v11 = vld [vmem:[#allocation6 + $0x38] sm:$0xff]  ;;  %s431_s22 = scalar_lea.vmem %s245_s21, 256  ;;  %p436_p11 = scmp.lt.s32.totalorder %s245_s21, %s245_s21 }
  0x39   :  { %324 = vmatprep.subr.bf16.mxu0 %v323_v3  ;;  %v331_v8 = vpack.c.bf16 %v63_v7, %v62_v6  ;;  %v64_v10 = vld [vmem:[#allocation6 + $0x30] sm:$0xff]  ;;  %313 = vmatprep.mubr.f32.mxu0 %v56_v9  ;;  %v66_v13 = vld [vmem:[#allocation6 + $0x40] sm:$0xff]  ;;  %v67_v14 = vld [vmem:[#allocation6 + $0x48] sm:$0xff]  ;;  %p432_p10 = scmp.ne.s32.totalorder %s245_s21, %s431_s22  ;;  %p437_p12 = scmp.lt.s32.totalorder %s431_s22, %s431_s22 }
  0x3a   :  { %326 = vmatpush3.bf16.msra.mxu0 %v323_v3  ;;  %v335_v12 = vpack.c.bf16 %v65_v11, %v64_v10  ;;  %v339_v15 = vpack.c.bf16 %v67_v14, %v66_v13  ;;  %v68_v16 = vld [vmem:[#allocation6 + $0x50] sm:$0xff]  ;;  %v69_v17 = vld [vmem:[#allocation6 + $0x58] sm:$0xff]  ;;  %v70_v19 = vld [vmem:[#allocation6 + $0x60] sm:$0xff] }
  0x3b   :  { %328 = vmatprep.subr.bf16.mxu0 %v327_v5  ;;  %v343_v18 = vpack.c.bf16 %v69_v17, %v68_v16  ;;  %v71_v20 = vld [vmem:[#allocation6 + $0x68] sm:$0xff]  ;;  %v72_v22 = vld [vmem:[#allocation6 + $0x70] sm:$0xff]  ;;  %v73_v23 = vld [vmem:[#allocation6 + $0x78] sm:$0xff]  ;;  %p438_p13 = por %p437_p12, %p436_p11 }
  0x3c   :  { %v347_v21 = vpack.c.bf16 %v71_v20, %v70_v19  ;;  %v351_v24 = vpack.c.bf16 %v73_v23, %v72_v22  ;;  %v57_v25 = vld [vmem:[#allocation3 + $0x8] sm:$0xff]  ;;  %v151_v26 = vld [vmem:[#allocation8] sm:$0xff]  ;;  %v152_v30 = vld [vmem:[#allocation8 + $0x8] sm:$0xff] }
  0x3d   :  { %320 = vmatprep.mubr.msk.f32.mxu1 %vm155_vm0, %v151_v26  ;;  %p439_p0 = pnand %p438_p13, %p432_p10 }
  0x3e   :  { %330 = vmatpush3.bf16.msra.mxu0 %v327_v5 }
  0x3f   :  { %332 = vmatprep.subr.bf16.mxu0 %v331_v8 }
  0x42   :  { %334 = vmatpush3.bf16.msra.mxu0 %v331_v8 }
  0x43   :  { %336 = vmatprep.subr.bf16.mxu0 %v335_v12 }
  0x46   :  { %338 = vmatpush3.bf16.msra.mxu0 %v335_v12 }
  0x47   :  { %340 = vmatprep.subr.bf16.mxu0 %v339_v15 }
  0x4a   :  { %342 = vmatpush3.bf16.msra.mxu0 %v339_v15 }
  0x4b   :  { %344 = vmatprep.subr.bf16.mxu0 %v343_v18 }
  0x4e   :  { %346 = vmatpush3.bf16.msra.mxu0 %v343_v18 }
  0x4f   :  { %348 = vmatprep.subr.bf16.mxu0 %v347_v21 }
  0x52   :  { %350 = vmatpush3.bf16.msra.mxu0 %v347_v21 }
  0x53   :  { %352 = vmatprep.subr.bf16.mxu0 %v351_v24 }
  0x56   :  { %354 = vmatpush3.bf16.msra.mxu0 %v351_v24 }
  0x59   :  { %314 = vmatmul.mubr.f32.vlgmr.msra.gmra.mrb[0].mxu0 %v57_v25 }
 0x12c   :  { %v315_v27 = vpop.f32.mrb[0].mxu0 }
 0x12d   :  { %v140_v28 = vpop.f32.mrb[1].mxu0 }
 0x12e   :  { %v355_v29 = vpack.c.bf16 %v315_v27, %v140_v28 }
 0x130   :  { %356 = vmatprep.subr.bf16.mxu1 %v355_v29 }
 0x131   :  { %358 = vmatpush3.bf16.msra.mxu1 %v355_v29 }
 0x134   :  { %321 = vmatmul.mubr.msk.f32.vlgmr.msra.gmra.mrb[0].mxu1 %vm155_vm0, %v152_v30 }
 0x207   :  { %v322_v31 = vpop.f32.mrb[0].mxu1 }
 0x208   :  { %238 = vst [vmem:[#allocation9 + $0x8] sm:$0xff] %v322_v31  ;;  %v228_v32 = vpop.f32.mrb[1].mxu1 }
 0x209   :  { %237 = vst [vmem:[#allocation9] sm:$0xff] %v228_v32 }
 0x20a   :  { %442 = shalt.err (!%p439_p0)
}
 0x20b   :  { %s443_s27 = scalar_lea.hbm %s555_s3, 256 }
 0x20c   :  { %p444_p1 = scmp.ne.s32.totalorder %s555_s3, %s443_s27  ;;  %p447_p2 = scmp.lt.u32.totalorder %s443_s27, %s555_s3 }
 0x20e   :  { %p449_p3 = pnand %p447_p2, %p444_p1 }
 0x210   :  { %452 = shalt.err (!%p449_p3)
}
 0x211   :  { %250 = dma.vmem_to_hbm [thread:$0]  %s245_s21, 256, %s555_s3, [#allocation5], %s461_s24, %s461_s24, %s462_s25  }
 0x212   :  { %457 = dma.done.wait [#allocation5], 256  }
 0x213   :  { %458 = vsyncadd [#allocation5], 4294967040 }
 0x214   :  { %254 = vsyncpa [#allocation4], 1 }
 0x215   :  { %255 = vsyncpa [#allocation7], 1 }
 0x216   :  { %256 = vsyncpa [#allocation5], 1 }

</bundles_post_ra>
